<compile_context>
chip_gen: v7x
topology: tpu7x:2x2x1
jax: 0.10.0
libtpu: 0.0.40
codegen_flags: <defaults>
</compile_context>

<pallas_src>
import math
from functools import partial

import jax
import jax.numpy as jnp
import numpy as np
from jax import lax
from jax.experimental import pallas as pl
from jax.experimental.pallas import tpu as pltpu

LN_EPS = 1e-5  # PyTorch nn.LayerNorm default

_DN_STD = (((1,), (0,)), ((), ()))   # a @ b
_DN_TRB = (((1,), (1,)), ((), ()))   # a @ b.T without materializing a transpose


def _layernorm(z, gamma, beta):
    mu = jnp.mean(z, axis=-1, keepdims=True)
    var = jnp.mean((z - mu) ** 2, axis=-1, keepdims=True)
    return (z - mu) * lax.rsqrt(var + LN_EPS) * gamma + beta


def _gelu_exact(z):
    return 0.5 * z * (1.0 + lax.erf(z * (1.0 / math.sqrt(2.0))))


def block_kernel(x_ref, g1_ref, b1_ref, wqkv_ref, wproj_ref, bproj_ref,
                 g2_ref, b2_ref, wfc1_ref, bfc1_ref, wfc2_ref, bfc2_ref,
                 o_ref, ctx_ref, *, num_heads, scale):
    x = x_ref[...]                               # (N, C) fp32, one batch element
    N, C = x.shape
    hd = C // num_heads

    # ---- norm1 (fp32 elementwise) -------------------------------------------
    xn = _layernorm(x, g1_ref[...], b1_ref[...])

    # ---- QKV projection: bf16 MXU inputs, f32 accumulation -------------------
    qkv = lax.dot_general(xn.astype(jnp.bfloat16), wqkv_ref[...], _DN_STD,
                          preferred_element_type=jnp.float32)       # (N, 3C)

    q = qkv[:, 0 * C:1 * C] * scale              # fold scale into q once
    k = qkv[:, 1 * C:2 * C]
    v = qkv[:, 2 * C:3 * C]
    qb = q.astype(jnp.bfloat16)
    kb = k.astype(jnp.bfloat16)
    vb = v.astype(jnp.bfloat16)

    # ---- per-head attention; heads written straight into the VMEM scratch ----
    for h in range(num_heads):                   # static unrolled loop
        lo = h * hd
        s = lax.dot_general(qb[:, lo:lo + hd], kb[:, lo:lo + hd], _DN_TRB,
                            preferred_element_type=jnp.float32)     # (N, N)
        s = s - jnp.max(s, axis=-1, keepdims=True)
        p = jnp.exp(s)                                              # fp32 softmax
        p = p * pl.reciprocal(jnp.sum(p, axis=-1, keepdims=True), approx=True)
        ctx_h = lax.dot_general(p.astype(jnp.bfloat16), vb[:, lo:lo + hd], _DN_STD,
                                preferred_element_type=jnp.float32)  # (N, hd)
        ctx_ref[:, lo:lo + hd] = ctx_h           # no list / no lane concat

    # ---- output projection (single full-K matmul) + residual 1 --------------
    attn_o = lax.dot_general(ctx_ref[...].astype(jnp.bfloat16), wproj_ref[...],
                             _DN_STD, preferred_element_type=jnp.float32)
    x1 = x + attn_o + bproj_ref[...]

    # ---- norm2 + MLP + residual 2 -------------------------------------------
    xn2 = _layernorm(x1, g2_ref[...], b2_ref[...])
    h1 = lax.dot_general(xn2.astype(jnp.bfloat16), wfc1_ref[...], _DN_STD,
                         preferred_element_type=jnp.float32) + bfc1_ref[...]
    h1 = _gelu_exact(h1)                          # fp32
    mlp_o = lax.dot_general(h1.astype(jnp.bfloat16), wfc2_ref[...], _DN_STD,
                            preferred_element_type=jnp.float32) + bfc2_ref[...]

    o_ref[...] = (x1 + mlp_o).astype(o_ref.dtype)


def block_forward(x, params, num_heads):
    B, N, C = x.shape
    H = params["w_fc1"].shape[1]
    scale = (C // num_heads) ** (-0.5)

    bf16 = jnp.bfloat16
    w_qkv = params["w_qkv"].astype(bf16)
    w_proj = params["w_proj"].astype(bf16)
    w_fc1 = params["w_fc1"].astype(bf16)
    w_fc2 = params["w_fc2"].astype(bf16)

    # ---- explicit VMEM budget (bf16 weights + double-buffered blocks + temps) ----
    w_bytes = 2 * (C * 3 * C + C * C + C * H + H * C)          # bf16 weights
    p_bytes = 4 * (5 * C + H)                                  # fp32 LN params + biases
    act_bytes = 4 * N * C * 2                                  # x block + out block
    tmp_bytes = 4 * (N * 3 * C + N * N + N * H + 6 * N * C)    # qkv, scores, h1, temps
    vmem_limit = int(1.5 * (2 * (w_bytes + p_bytes + act_bytes) + tmp_bytes))
    vmem_limit = min(max(vmem_limit, 8 * 1024 * 1024), 100 * 1024 * 1024)

    cost = pl.CostEstimate(
        flops=2 * B * N * (3 * C * C + C * C + 2 * N * C + 2 * C * H),
        transcendentals=B * (num_heads * N * N + N * H + 2 * N),
        bytes_accessed=2 * B * N * C * 4 + w_bytes + p_bytes,
    )

    kernel = partial(block_kernel, num_heads=num_heads, scale=scale)

    return pl.pallas_call(
        kernel,
        out_shape=jax.ShapeDtypeStruct((B, N, C), x.dtype),
        grid_spec=pltpu.PrefetchScalarGridSpec(
            num_scalar_prefetch=0,
            grid=(B,),
            in_specs=[
                pl.BlockSpec((pl.Squeezed(), N, C), lambda b: (b, 0, 0)),  # x
                pl.BlockSpec((1, C), lambda b: (0, 0)),          # norm1 gamma
                pl.BlockSpec((1, C), lambda b: (0, 0)),          # norm1 beta
                pl.BlockSpec((C, 3 * C), lambda b: (0, 0)),      # W_qkv (bf16)
                pl.BlockSpec((C, C), lambda b: (0, 0)),          # W_proj (bf16)
                pl.BlockSpec((1, C), lambda b: (0, 0)),          # b_proj
                pl.BlockSpec((1, C), lambda b: (0, 0)),          # norm2 gamma
                pl.BlockSpec((1, C), lambda b: (0, 0)),          # norm2 beta
                pl.BlockSpec((C, H), lambda b: (0, 0)),          # W_fc1 (bf16)
                pl.BlockSpec((1, H), lambda b: (0, 0)),          # b_fc1
                pl.BlockSpec((H, C), lambda b: (0, 0)),          # W_fc2 (bf16)
                pl.BlockSpec((1, C), lambda b: (0, 0)),          # b_fc2
            ],
            out_specs=pl.BlockSpec((pl.Squeezed(), N, C), lambda b: (b, 0, 0)),
            scratch_shapes=[pltpu.VMEM((N, C), jnp.float32)],    # attention ctx
        ),
        compiler_params=pltpu.CompilerParams(
            dimension_semantics=("parallel",),      # B>=2 keeps both v7x TCs busy
            vmem_limit_bytes=vmem_limit),
        cost_estimate=cost,
    )(x, params["g1"], params["b1"], w_qkv, w_proj,
      params["b_proj"], params["g2"], params["b2"], w_fc1,
      params["b_fc1"], w_fc2, params["b_fc2"])


def block_ref(x, params, num_heads):
    """Pure-JAX fp32 reference (same math as the PyTorch module)."""
    B, N, C = x.shape
    hd = C // num_heads
    scale = hd ** (-0.5)

    xn = _layernorm(x, params["g1"], params["b1"])
    qkv = xn @ params["w_qkv"]                                   # (B, N, 3C)
    qkv = qkv.reshape(B, N, 3, num_heads, hd).transpose(2, 0, 3, 1, 4)
    q, k, v = qkv[0], qkv[1], qkv[2]                             # (B, h, N, hd)
    attn = jnp.einsum("bhnd,bhmd->bhnm", q, k) * scale
    attn = jax.nn.softmax(attn, axis=-1)
    o = jnp.einsum("bhnm,bhmd->bhnd", attn, v)
    o = o.transpose(0, 2, 1, 3).reshape(B, N, C)
    o = o @ params["w_proj"] + params["b_proj"]
    x1 = x + o
    xn2 = _layernorm(x1, params["g2"], params["b2"])
    h1 = _gelu_exact(xn2 @ params["w_fc1"] + params["b_fc1"])
    return x1 + (h1 @ params["w_fc2"] + params["b_fc2"])


if __name__ == "__main__":
    # Small shapes consistent with the module: B=2, N=8 tokens, dim=32, 4 heads,
    # mlp_ratio=4 -> hidden=128.
    B, N, C = 2, 8, 32
    num_heads = 4
    H = int(C * 4.0)

    key = jax.random.PRNGKey(0)
    keys = jax.random.split(key, 8)
    x = jax.random.normal(keys[0], (B, N, C), dtype=jnp.float32)

    params = {
        "g1": jnp.ones((1, C), jnp.float32),
        "b1": jnp.zeros((1, C), jnp.float32),
        "w_qkv": 0.02 * jax.random.normal(keys[1], (C, 3 * C), jnp.float32),
        "w_proj": 0.02 * jax.random.normal(keys[2], (C, C), jnp.float32),
        "b_proj": 0.01 * jax.random.normal(keys[3], (1, C), jnp.float32),
        "g2": jnp.ones((1, C), jnp.float32),
        "b2": jnp.zeros((1, C), jnp.float32),
        "w_fc1": 0.02 * jax.random.normal(keys[4], (C, H), jnp.float32),
        "b_fc1": 0.01 * jax.random.normal(keys[5], (1, H), jnp.float32),
        "w_fc2": 0.02 * jax.random.normal(keys[6], (H, C), jnp.float32),
        "b_fc2": 0.01 * jax.random.normal(keys[7], (1, C), jnp.float32),
    }

    out = jax.block_until_ready(block_forward(x, params, num_heads))
    ref = jax.block_until_ready(block_ref(x, params, num_heads))

    # bf16 MXU inputs + approx reciprocal => slightly looser tolerance vs fp32 ref.
    np.testing.assert_allclose(np.asarray(out), np.asarray(ref),
                               rtol=2e-2, atol=2e-2)

    # TODO(synk): win_size > 0 windowed-attention path (make_window / revert_window)
    # and rel_pos_bias are not exercised here; Block defaults to win_size=0 / None.
    print("KERNEL_OK")
</pallas_src>

<mosaic_0001>
module attributes {stable_mosaic.version = 11 : i64} {
  func.func @block_kernel(%arg0: i32, %arg1: memref<1x8x32xf32, #tpu.memory_space<vmem>>, %arg2: memref<1x32xf32, #tpu.memory_space<vmem>>, %arg3: memref<1x32xf32, #tpu.memory_space<vmem>>, %arg4: memref<32x96xbf16, #tpu.memory_space<vmem>>, %arg5: memref<32x32xbf16, #tpu.memory_space<vmem>>, %arg6: memref<1x32xf32, #tpu.memory_space<vmem>>, %arg7: memref<1x32xf32, #tpu.memory_space<vmem>>, %arg8: memref<1x32xf32, #tpu.memory_space<vmem>>, %arg9: memref<32x128xbf16, #tpu.memory_space<vmem>>, %arg10: memref<1x128xf32, #tpu.memory_space<vmem>>, %arg11: memref<128x32xbf16, #tpu.memory_space<vmem>>, %arg12: memref<1x32xf32, #tpu.memory_space<vmem>>, %arg13: memref<1x8x32xf32, #tpu.memory_space<vmem>>, %arg14: memref<8x32xf32, #tpu.memory_space<vmem>>) attributes {dimension_semantics = [#tpu.dimension_semantics<parallel>], iteration_bounds = array<i64: 2>, scalar_prefetch = 0 : i64, scratch_operands = 1 : i64, tpu.core_type = #tpu.core_type<tc>, window_params = [{transform_indices = @transform_0, window_bounds = array<i64: 1, 8, 32>}, {pipeline_mode = #tpu.pipeline_mode<synchronous>, transform_indices = @transform_1, window_bounds = array<i64: 1, 32>}, {pipeline_mode = #tpu.pipeline_mode<synchronous>, transform_indices = @transform_2, window_bounds = array<i64: 1, 32>}, {pipeline_mode = #tpu.pipeline_mode<synchronous>, transform_indices = @transform_3, window_bounds = array<i64: 32, 96>}, {pipeline_mode = #tpu.pipeline_mode<synchronous>, transform_indices = @transform_4, window_bounds = array<i64: 32, 32>}, {pipeline_mode = #tpu.pipeline_mode<synchronous>, transform_indices = @transform_5, window_bounds = array<i64: 1, 32>}, {pipeline_mode = #tpu.pipeline_mode<synchronous>, transform_indices = @transform_6, window_bounds = array<i64: 1, 32>}, {pipeline_mode = #tpu.pipeline_mode<synchronous>, transform_indices = @transform_7, window_bounds = array<i64: 1, 32>}, {pipeline_mode = #tpu.pipeline_mode<synchronous>, transform_indices = @transform_8, window_bounds = array<i64: 32, 128>}, {pipeline_mode = #tpu.pipeline_mode<synchronous>, transform_indices = @transform_9, window_bounds = array<i64: 1, 128>}, {pipeline_mode = #tpu.pipeline_mode<synchronous>, transform_indices = @transform_10, window_bounds = array<i64: 128, 32>}, {pipeline_mode = #tpu.pipeline_mode<synchronous>, transform_indices = @transform_11, window_bounds = array<i64: 1, 32>}, {transform_indices = @transform_12, window_bounds = array<i64: 1, 8, 32>}]} {
    %c0 = arith.constant 0 : index
    %c0_0 = arith.constant 0 : index
    %c0_1 = arith.constant 0 : index
    %0 = vector.load %arg1[%c0, %c0_0, %c0_1] : memref<1x8x32xf32, #tpu.memory_space<vmem>>, vector<1x8x32xf32>
    %1 = vector.shape_cast %0 : vector<1x8x32xf32> to vector<8x32xf32>
    %c0_2 = arith.constant 0 : index
    %c0_3 = arith.constant 0 : index
    %2 = vector.load %arg2[%c0_2, %c0_3] : memref<1x32xf32, #tpu.memory_space<vmem>>, vector<1x32xf32>
    %c0_4 = arith.constant 0 : index
    %c0_5 = arith.constant 0 : index
    %3 = vector.load %arg3[%c0_4, %c0_5] : memref<1x32xf32, #tpu.memory_space<vmem>>, vector<1x32xf32>
    %cst = arith.constant dense<0.000000e+00> : vector<8xf32>
    %4 = vector.multi_reduction <add>, %1, %cst [1] : vector<8x32xf32> to vector<8xf32>
    %5 = vector.shape_cast %4 : vector<8xf32> to vector<8x1xf32>
    %cst_6 = arith.constant 3.200000e+01 : f32
    %6 = vector.broadcast %cst_6 : f32 to vector<8x1xf32>
    %7 = arith.divf %5, %6 : vector<8x1xf32>
    %8 = vector.broadcast %7 : vector<8x1xf32> to vector<8x32xf32>
    %9 = arith.subf %1, %8 : vector<8x32xf32>
    %10 = arith.mulf %9, %9 : vector<8x32xf32>
    %cst_7 = arith.constant dense<0.000000e+00> : vector<8xf32>
    %11 = vector.multi_reduction <add>, %10, %cst_7 [1] : vector<8x32xf32> to vector<8xf32>
    %12 = vector.shape_cast %11 : vector<8xf32> to vector<8x1xf32>
    %cst_8 = arith.constant 3.200000e+01 : f32
    %13 = vector.broadcast %cst_8 : f32 to vector<8x1xf32>
    %14 = arith.divf %12, %13 : vector<8x1xf32>
    %15 = vector.broadcast %7 : vector<8x1xf32> to vector<8x32xf32>
    %16 = arith.subf %1, %15 : vector<8x32xf32>
    %cst_9 = arith.constant 9.99999974E-6 : f32
    %17 = vector.broadcast %cst_9 : f32 to vector<8x1xf32>
    %18 = arith.addf %14, %17 : vector<8x1xf32>
    %19 = math.rsqrt %18 : vector<8x1xf32>
    %20 = vector.broadcast %19 : vector<8x1xf32> to vector<8x32xf32>
    %21 = arith.mulf %16, %20 : vector<8x32xf32>
    %22 = vector.broadcast %2 : vector<1x32xf32> to vector<8x32xf32>
    %23 = arith.mulf %21, %22 : vector<8x32xf32>
    %24 = vector.broadcast %3 : vector<1x32xf32> to vector<8x32xf32>
    %25 = arith.addf %23, %24 : vector<8x32xf32>
    %26 = arith.truncf %25 : vector<8x32xf32> to vector<8x32xbf16>
    %c0_10 = arith.constant 0 : index
    %c0_11 = arith.constant 0 : index
    %27 = vector.load %arg4[%c0_10, %c0_11] : memref<32x96xbf16, #tpu.memory_space<vmem>>, vector<32x96xbf16>
    %cst_12 = arith.constant dense<0.000000e+00> : vector<8x96xf32>
    %28 = tpu.matmul %26, %27, %cst_12 {dimension_numbers = #tpu.dot_dimension_numbers<[1], [0], [0], [1], [0, 0, 1, 1], [], []>} : vector<8x32xbf16>, vector<32x96xbf16>, vector<8x96xf32> -> vector<8x96xf32>
    %29 = vector.extract_strided_slice %28 {offsets = [0, 0], sizes = [8, 32], strides = [1, 1]} : vector<8x96xf32> to vector<8x32xf32>
    %cst_13 = arith.constant 0.353553385 : f32
    %30 = vector.broadcast %cst_13 : f32 to vector<8x32xf32>
    %31 = arith.mulf %29, %30 : vector<8x32xf32>
    %32 = vector.extract_strided_slice %28 {offsets = [0, 32], sizes = [8, 32], strides = [1, 1]} : vector<8x96xf32> to vector<8x32xf32>
    %33 = vector.extract_strided_slice %28 {offsets = [0, 64], sizes = [8, 32], strides = [1, 1]} : vector<8x96xf32> to vector<8x32xf32>
    %34 = arith.truncf %31 : vector<8x32xf32> to vector<8x32xbf16>
    %35 = arith.truncf %32 : vector<8x32xf32> to vector<8x32xbf16>
    %36 = arith.truncf %33 : vector<8x32xf32> to vector<8x32xbf16>
    %37 = vector.extract_strided_slice %34 {offsets = [0, 0], sizes = [8, 8], strides = [1, 1]} : vector<8x32xbf16> to vector<8x8xbf16>
    %38 = vector.extract_strided_slice %35 {offsets = [0, 0], sizes = [8, 8], strides = [1, 1]} : vector<8x32xbf16> to vector<8x8xbf16>
    %cst_14 = arith.constant dense<0.000000e+00> : vector<8x8xf32>
    %39 = tpu.matmul %37, %38, %cst_14 {dimension_numbers = #tpu.dot_dimension_numbers<[1], [1], [0], [0], [0, 0, 1, 0], [], []>} : vector<8x8xbf16>, vector<8x8xbf16>, vector<8x8xf32> -> vector<8x8xf32>
    %cst_15 = arith.constant dense<0xFF800000> : vector<8xf32>
    %40 = vector.multi_reduction <maximumf>, %39, %cst_15 [1] : vector<8x8xf32> to vector<8xf32>
    %41 = vector.shape_cast %40 : vector<8xf32> to vector<8x1xf32>
    %42 = vector.broadcast %41 : vector<8x1xf32> to vector<8x8xf32>
    %43 = arith.subf %39, %42 : vector<8x8xf32>
    %44 = math.exp %43 : vector<8x8xf32>
    %cst_16 = arith.constant dense<0.000000e+00> : vector<8xf32>
    %45 = vector.multi_reduction <add>, %44, %cst_16 [1] : vector<8x8xf32> to vector<8xf32>
    %46 = vector.shape_cast %45 : vector<8xf32> to vector<8x1xf32>
    %47 = tpu.reciprocal %46 {approx = true} : vector<8x1xf32> -> vector<8x1xf32>
    %48 = vector.broadcast %47 : vector<8x1xf32> to vector<8x8xf32>
    %49 = arith.mulf %44, %48 : vector<8x8xf32>
    %50 = arith.truncf %49 : vector<8x8xf32> to vector<8x8xbf16>
    %51 = vector.extract_strided_slice %36 {offsets = [0, 0], sizes = [8, 8], strides = [1, 1]} : vector<8x32xbf16> to vector<8x8xbf16>
    %cst_17 = arith.constant dense<0.000000e+00> : vector<8x8xf32>
    %52 = tpu.matmul %50, %51, %cst_17 {dimension_numbers = #tpu.dot_dimension_numbers<[1], [0], [0], [1], [0, 0, 1, 1], [], []>} : vector<8x8xbf16>, vector<8x8xbf16>, vector<8x8xf32> -> vector<8x8xf32>
    %c0_18 = arith.constant 0 : index
    %c0_19 = arith.constant 0 : index
    %53 = vector.load %arg14[%c0_18, %c0_19] : memref<8x32xf32, #tpu.memory_space<vmem>>, vector<8x8xf32>
    tpu.vector_store %arg14[%c0_18, %c0_19], %52 {strides = array<i32>} : memref<8x32xf32, #tpu.memory_space<vmem>>, vector<8x8xf32>,
    %54 = vector.extract_strided_slice %34 {offsets = [0, 8], sizes = [8, 8], strides = [1, 1]} : vector<8x32xbf16> to vector<8x8xbf16>
    %55 = vector.extract_strided_slice %35 {offsets = [0, 8], sizes = [8, 8], strides = [1, 1]} : vector<8x32xbf16> to vector<8x8xbf16>
    %cst_20 = arith.constant dense<0.000000e+00> : vector<8x8xf32>
    %56 = tpu.matmul %54, %55, %cst_20 {dimension_numbers = #tpu.dot_dimension_numbers<[1], [1], [0], [0], [0, 0, 1, 0], [], []>} : vector<8x8xbf16>, vector<8x8xbf16>, vector<8x8xf32> -> vector<8x8xf32>
    %cst_21 = arith.constant dense<0xFF800000> : vector<8xf32>
    %57 = vector.multi_reduction <maximumf>, %56, %cst_21 [1] : vector<8x8xf32> to vector<8xf32>
    %58 = vector.shape_cast %57 : vector<8xf32> to vector<8x1xf32>
    %59 = vector.broadcast %58 : vector<8x1xf32> to vector<8x8xf32>
    %60 = arith.subf %56, %59 : vector<8x8xf32>
    %61 = math.exp %60 : vector<8x8xf32>
    %cst_22 = arith.constant dense<0.000000e+00> : vector<8xf32>
    %62 = vector.multi_reduction <add>, %61, %cst_22 [1] : vector<8x8xf32> to vector<8xf32>
    %63 = vector.shape_cast %62 : vector<8xf32> to vector<8x1xf32>
    %64 = tpu.reciprocal %63 {approx = true} : vector<8x1xf32> -> vector<8x1xf32>
    %65 = vector.broadcast %64 : vector<8x1xf32> to vector<8x8xf32>
    %66 = arith.mulf %61, %65 : vector<8x8xf32>
    %67 = arith.truncf %66 : vector<8x8xf32> to vector<8x8xbf16>
    %68 = vector.extract_strided_slice %36 {offsets = [0, 8], sizes = [8, 8], strides = [1, 1]} : vector<8x32xbf16> to vector<8x8xbf16>
    %cst_23 = arith.constant dense<0.000000e+00> : vector<8x8xf32>
    %69 = tpu.matmul %67, %68, %cst_23 {dimension_numbers = #tpu.dot_dimension_numbers<[1], [0], [0], [1], [0, 0, 1, 1], [], []>} : vector<8x8xbf16>, vector<8x8xbf16>, vector<8x8xf32> -> vector<8x8xf32>
    %c0_24 = arith.constant 0 : index
    %c8 = arith.constant 8 : index
    %70 = vector.load %arg14[%c0_24, %c8] : memref<8x32xf32, #tpu.memory_space<vmem>>, vector<8x8xf32>
    tpu.vector_store %arg14[%c0_24, %c8], %69 {strides = array<i32>} : memref<8x32xf32, #tpu.memory_space<vmem>>, vector<8x8xf32>,
    %71 = vector.extract_strided_slice %34 {offsets = [0, 16], sizes = [8, 8], strides = [1, 1]} : vector<8x32xbf16> to vector<8x8xbf16>
    %72 = vector.extract_strided_slice %35 {offsets = [0, 16], sizes = [8, 8], strides = [1, 1]} : vector<8x32xbf16> to vector<8x8xbf16>
    %cst_25 = arith.constant dense<0.000000e+00> : vector<8x8xf32>
    %73 = tpu.matmul %71, %72, %cst_25 {dimension_numbers = #tpu.dot_dimension_numbers<[1], [1], [0], [0], [0, 0, 1, 0], [], []>} : vector<8x8xbf16>, vector<8x8xbf16>, vector<8x8xf32> -> vector<8x8xf32>
    %cst_26 = arith.constant dense<0xFF800000> : vector<8xf32>
    %74 = vector.multi_reduction <maximumf>, %73, %cst_26 [1] : vector<8x8xf32> to vector<8xf32>
    %75 = vector.shape_cast %74 : vector<8xf32> to vector<8x1xf32>
    %76 = vector.broadcast %75 : vector<8x1xf32> to vector<8x8xf32>
    %77 = arith.subf %73, %76 : vector<8x8xf32>
    %78 = math.exp %77 : vector<8x8xf32>
    %cst_27 = arith.constant dense<0.000000e+00> : vector<8xf32>
    %79 = vector.multi_reduction <add>, %78, %cst_27 [1] : vector<8x8xf32> to vector<8xf32>
    %80 = vector.shape_cast %79 : vector<8xf32> to vector<8x1xf32>
    %81 = tpu.reciprocal %80 {approx = true} : vector<8x1xf32> -> vector<8x1xf32>
    %82 = vector.broadcast %81 : vector<8x1xf32> to vector<8x8xf32>
    %83 = arith.mulf %78, %82 : vector<8x8xf32>
    %84 = arith.truncf %83 : vector<8x8xf32> to vector<8x8xbf16>
    %85 = vector.extract_strided_slice %36 {offsets = [0, 16], sizes = [8, 8], strides = [1, 1]} : vector<8x32xbf16> to vector<8x8xbf16>
    %cst_28 = arith.constant dense<0.000000e+00> : vector<8x8xf32>
    %86 = tpu.matmul %84, %85, %cst_28 {dimension_numbers = #tpu.dot_dimension_numbers<[1], [0], [0], [1], [0, 0, 1, 1], [], []>} : vector<8x8xbf16>, vector<8x8xbf16>, vector<8x8xf32> -> vector<8x8xf32>
    %c0_29 = arith.constant 0 : index
    %c16 = arith.constant 16 : index
    %87 = vector.load %arg14[%c0_29, %c16] : memref<8x32xf32, #tpu.memory_space<vmem>>, vector<8x8xf32>
    tpu.vector_store %arg14[%c0_29, %c16], %86 {strides = array<i32>} : memref<8x32xf32, #tpu.memory_space<vmem>>, vector<8x8xf32>,
    %88 = vector.extract_strided_slice %34 {offsets = [0, 24], sizes = [8, 8], strides = [1, 1]} : vector<8x32xbf16> to vector<8x8xbf16>
    %89 = vector.extract_strided_slice %35 {offsets = [0, 24], sizes = [8, 8], strides = [1, 1]} : vector<8x32xbf16> to vector<8x8xbf16>
    %cst_30 = arith.constant dense<0.000000e+00> : vector<8x8xf32>
    %90 = tpu.matmul %88, %89, %cst_30 {dimension_numbers = #tpu.dot_dimension_numbers<[1], [1], [0], [0], [0, 0, 1, 0], [], []>} : vector<8x8xbf16>, vector<8x8xbf16>, vector<8x8xf32> -> vector<8x8xf32>
    %cst_31 = arith.constant dense<0xFF800000> : vector<8xf32>
    %91 = vector.multi_reduction <maximumf>, %90, %cst_31 [1] : vector<8x8xf32> to vector<8xf32>
    %92 = vector.shape_cast %91 : vector<8xf32> to vector<8x1xf32>
    %93 = vector.broadcast %92 : vector<8x1xf32> to vector<8x8xf32>
    %94 = arith.subf %90, %93 : vector<8x8xf32>
    %95 = math.exp %94 : vector<8x8xf32>
    %cst_32 = arith.constant dense<0.000000e+00> : vector<8xf32>
    %96 = vector.multi_reduction <add>, %95, %cst_32 [1] : vector<8x8xf32> to vector<8xf32>
    %97 = vector.shape_cast %96 : vector<8xf32> to vector<8x1xf32>
    %98 = tpu.reciprocal %97 {approx = true} : vector<8x1xf32> -> vector<8x1xf32>
    %99 = vector.broadcast %98 : vector<8x1xf32> to vector<8x8xf32>
    %100 = arith.mulf %95, %99 : vector<8x8xf32>
    %101 = arith.truncf %100 : vector<8x8xf32> to vector<8x8xbf16>
    %102 = vector.extract_strided_slice %36 {offsets = [0, 24], sizes = [8, 8], strides = [1, 1]} : vector<8x32xbf16> to vector<8x8xbf16>
    %cst_33 = arith.constant dense<0.000000e+00> : vector<8x8xf32>
    %103 = tpu.matmul %101, %102, %cst_33 {dimension_numbers = #tpu.dot_dimension_numbers<[1], [0], [0], [1], [0, 0, 1, 1], [], []>} : vector<8x8xbf16>, vector<8x8xbf16>, vector<8x8xf32> -> vector<8x8xf32>
    %c0_34 = arith.constant 0 : index
    %c24 = arith.constant 24 : index
    %104 = vector.load %arg14[%c0_34, %c24] : memref<8x32xf32, #tpu.memory_space<vmem>>, vector<8x8xf32>
    tpu.vector_store %arg14[%c0_34, %c24], %103 {strides = array<i32>} : memref<8x32xf32, #tpu.memory_space<vmem>>, vector<8x8xf32>,
    %c0_35 = arith.constant 0 : index
    %c0_36 = arith.constant 0 : index
    %105 = vector.load %arg14[%c0_35, %c0_36] : memref<8x32xf32, #tpu.memory_space<vmem>>, vector<8x32xf32>
    %106 = arith.truncf %105 : vector<8x32xf32> to vector<8x32xbf16>
    %c0_37 = arith.constant 0 : index
    %c0_38 = arith.constant 0 : index
    %107 = vector.load %arg5[%c0_37, %c0_38] : memref<32x32xbf16, #tpu.memory_space<vmem>>, vector<32x32xbf16>
    %cst_39 = arith.constant dense<0.000000e+00> : vector<8x32xf32>
    %108 = tpu.matmul %106, %107, %cst_39 {dimension_numbers = #tpu.dot_dimension_numbers<[1], [0], [0], [1], [0, 0, 1, 1], [], []>} : vector<8x32xbf16>, vector<32x32xbf16>, vector<8x32xf32> -> vector<8x32xf32>
    %109 = arith.addf %1, %108 : vector<8x32xf32>
    %c0_40 = arith.constant 0 : index
    %c0_41 = arith.constant 0 : index
    %110 = vector.load %arg6[%c0_40, %c0_41] : memref<1x32xf32, #tpu.memory_space<vmem>>, vector<1x32xf32>
    %111 = vector.broadcast %110 : vector<1x32xf32> to vector<8x32xf32>
    %112 = arith.addf %109, %111 : vector<8x32xf32>
    %c0_42 = arith.constant 0 : index
    %c0_43 = arith.constant 0 : index
    %113 = vector.load %arg7[%c0_42, %c0_43] : memref<1x32xf32, #tpu.memory_space<vmem>>, vector<1x32xf32>
    %c0_44 = arith.constant 0 : index
    %c0_45 = arith.constant 0 : index
    %114 = vector.load %arg8[%c0_44, %c0_45] : memref<1x32xf32, #tpu.memory_space<vmem>>, vector<1x32xf32>
    %cst_46 = arith.constant dense<0.000000e+00> : vector<8xf32>
    %115 = vector.multi_reduction <add>, %112, %cst_46 [1] : vector<8x32xf32> to vector<8xf32>
    %116 = vector.shape_cast %115 : vector<8xf32> to vector<8x1xf32>
    %cst_47 = arith.constant 3.200000e+01 : f32
    %117 = vector.broadcast %cst_47 : f32 to vector<8x1xf32>
    %118 = arith.divf %116, %117 : vector<8x1xf32>
    %119 = vector.broadcast %118 : vector<8x1xf32> to vector<8x32xf32>
    %120 = arith.subf %112, %119 : vector<8x32xf32>
    %121 = arith.mulf %120, %120 : vector<8x32xf32>
    %cst_48 = arith.constant dense<0.000000e+00> : vector<8xf32>
    %122 = vector.multi_reduction <add>, %121, %cst_48 [1] : vector<8x32xf32> to vector<8xf32>
    %123 = vector.shape_cast %122 : vector<8xf32> to vector<8x1xf32>
    %cst_49 = arith.constant 3.200000e+01 : f32
    %124 = vector.broadcast %cst_49 : f32 to vector<8x1xf32>
    %125 = arith.divf %123, %124 : vector<8x1xf32>
    %126 = vector.broadcast %118 : vector<8x1xf32> to vector<8x32xf32>
    %127 = arith.subf %112, %126 : vector<8x32xf32>
    %cst_50 = arith.constant 9.99999974E-6 : f32
    %128 = vector.broadcast %cst_50 : f32 to vector<8x1xf32>
    %129 = arith.addf %125, %128 : vector<8x1xf32>
    %130 = math.rsqrt %129 : vector<8x1xf32>
    %131 = vector.broadcast %130 : vector<8x1xf32> to vector<8x32xf32>
    %132 = arith.mulf %127, %131 : vector<8x32xf32>
    %133 = vector.broadcast %113 : vector<1x32xf32> to vector<8x32xf32>
    %134 = arith.mulf %132, %133 : vector<8x32xf32>
    %135 = vector.broadcast %114 : vector<1x32xf32> to vector<8x32xf32>
    %136 = arith.addf %134, %135 : vector<8x32xf32>
    %137 = arith.truncf %136 : vector<8x32xf32> to vector<8x32xbf16>
    %c0_51 = arith.constant 0 : index
    %c0_52 = arith.constant 0 : index
    %138 = vector.load %arg9[%c0_51, %c0_52] : memref<32x128xbf16, #tpu.memory_space<vmem>>, vector<32x128xbf16>
    %cst_53 = arith.constant dense<0.000000e+00> : vector<8x128xf32>
    %139 = tpu.matmul %137, %138, %cst_53 {dimension_numbers = #tpu.dot_dimension_numbers<[1], [0], [0], [1], [0, 0, 1, 1], [], []>} : vector<8x32xbf16>, vector<32x128xbf16>, vector<8x128xf32> -> vector<8x128xf32>
    %c0_54 = arith.constant 0 : index
    %c0_55 = arith.constant 0 : index
    %140 = vector.load %arg10[%c0_54, %c0_55] : memref<1x128xf32, #tpu.memory_space<vmem>>, vector<1x128xf32>
    %141 = vector.broadcast %140 : vector<1x128xf32> to vector<8x128xf32>
    %142 = arith.addf %139, %141 : vector<8x128xf32>
    %cst_56 = arith.constant 5.000000e-01 : f32
    %143 = vector.broadcast %cst_56 : f32 to vector<8x128xf32>
    %144 = arith.mulf %143, %142 : vector<8x128xf32>
    %cst_57 = arith.constant 0.707106769 : f32
    %145 = vector.broadcast %cst_57 : f32 to vector<8x128xf32>
    %146 = arith.mulf %142, %145 : vector<8x128xf32>
    %147 = math.erf %146 : vector<8x128xf32>
    %cst_58 = arith.constant 1.000000e+00 : f32
    %148 = vector.broadcast %cst_58 : f32 to vector<8x128xf32>
    %149 = arith.addf %148, %147 : vector<8x128xf32>
    %150 = arith.mulf %144, %149 : vector<8x128xf32>
    %151 = arith.truncf %150 : vector<8x128xf32> to vector<8x128xbf16>
    %c0_59 = arith.constant 0 : index
    %c0_60 = arith.constant 0 : index
    %152 = vector.load %arg11[%c0_59, %c0_60] : memref<128x32xbf16, #tpu.memory_space<vmem>>, vector<128x32xbf16>
    %cst_61 = arith.constant dense<0.000000e+00> : vector<8x32xf32>
    %153 = tpu.matmul %151, %152, %cst_61 {dimension_numbers = #tpu.dot_dimension_numbers<[1], [0], [0], [1], [0, 0, 1, 1], [], []>} : vector<8x128xbf16>, vector<128x32xbf16>, vector<8x32xf32> -> vector<8x32xf32>
    %c0_62 = arith.constant 0 : index
    %c0_63 = arith.constant 0 : index
    %154 = vector.load %arg12[%c0_62, %c0_63] : memref<1x32xf32, #tpu.memory_space<vmem>>, vector<1x32xf32>
    %155 = vector.broadcast %154 : vector<1x32xf32> to vector<8x32xf32>
    %156 = arith.addf %153, %155 : vector<8x32xf32>
    %157 = arith.addf %112, %156 : vector<8x32xf32>
    %c0_64 = arith.constant 0 : index
    %c0_65 = arith.constant 0 : index
    %c0_66 = arith.constant 0 : index
    %158 = vector.load %arg13[%c0_64, %c0_65, %c0_66] : memref<1x8x32xf32, #tpu.memory_space<vmem>>, vector<1x8x32xf32>
    %159 = vector.shape_cast %158 : vector<1x8x32xf32> to vector<8x32xf32>
    %160 = vector.shape_cast %157 : vector<8x32xf32> to vector<1x8x32xf32>
    tpu.vector_store %arg13[%c0_64, %c0_65, %c0_66], %160 {strides = array<i32>} : memref<1x8x32xf32, #tpu.memory_space<vmem>>, vector<1x8x32xf32>,
    return
  }
  func.func @transform_0(%arg0: i32) -> (i32, i32, i32) {
    %c0_i32 = arith.constant 0 : i32
    %c0_i32_0 = arith.constant 0 : i32
    %c0_i32_1 = arith.constant 0 : i32
    return %arg0, %c0_i32, %c0_i32_0 : i32, i32, i32
  }
  func.func @transform_1(%arg0: i32) -> (i32, i32) {
    %c0_i32 = arith.constant 0 : i32
    %c0_i32_0 = arith.constant 0 : i32
    %c0_i32_1 = arith.constant 0 : i32
    return %c0_i32, %c0_i32_0 : i32, i32
  }
  func.func @transform_2(%arg0: i32) -> (i32, i32) {
    %c0_i32 = arith.constant 0 : i32
    %c0_i32_0 = arith.constant 0 : i32
    %c0_i32_1 = arith.constant 0 : i32
    return %c0_i32, %c0_i32_0 : i32, i32
  }
  func.func @transform_3(%arg0: i32) -> (i32, i32) {
    %c0_i32 = arith.constant 0 : i32
    %c0_i32_0 = arith.constant 0 : i32
    %c0_i32_1 = arith.constant 0 : i32
    return %c0_i32, %c0_i32_0 : i32, i32
  }
  func.func @transform_4(%arg0: i32) -> (i32, i32) {
    %c0_i32 = arith.constant 0 : i32
    %c0_i32_0 = arith.constant 0 : i32
    %c0_i32_1 = arith.constant 0 : i32
    return %c0_i32, %c0_i32_0 : i32, i32
  }
  func.func @transform_5(%arg0: i32) -> (i32, i32) {
    %c0_i32 = arith.constant 0 : i32
    %c0_i32_0 = arith.constant 0 : i32
    %c0_i32_1 = arith.constant 0 : i32
    return %c0_i32, %c0_i32_0 : i32, i32
  }
  func.func @transform_6(%arg0: i32) -> (i32, i32) {
    %c0_i32 = arith.constant 0 : i32
    %c0_i32_0 = arith.constant 0 : i32
    %c0_i32_1 = arith.constant 0 : i32
    return %c0_i32, %c0_i32_0 : i32, i32
  }
  func.func @transform_7(%arg0: i32) -> (i32, i32) {
    %c0_i32 = arith.constant 0 : i32
    %c0_i32_0 = arith.constant 0 : i32
    %c0_i32_1 = arith.constant 0 : i32
    return %c0_i32, %c0_i32_0 : i32, i32
  }
  func.func @transform_8(%arg0: i32) -> (i32, i32) {
    %c0_i32 = arith.constant 0 : i32
    %c0_i32_0 = arith.constant 0 : i32
    %c0_i32_1 = arith.constant 0 : i32
    return %c0_i32, %c0_i32_0 : i32, i32
  }
  func.func @transform_9(%arg0: i32) -> (i32, i32) {
    %c0_i32 = arith.constant 0 : i32
    %c0_i32_0 = arith.constant 0 : i32
    %c0_i32_1 = arith.constant 0 : i32
    return %c0_i32, %c0_i32_0 : i32, i32
  }
  func.func @transform_10(%arg0: i32) -> (i32, i32) {
    %c0_i32 = arith.constant 0 : i32
    %c0_i32_0 = arith.constant 0 : i32
    %c0_i32_1 = arith.constant 0 : i32
    return %c0_i32, %c0_i32_0 : i32, i32
  }
  func.func @transform_11(%arg0: i32) -> (i32, i32) {
    %c0_i32 = arith.constant 0 : i32
    %c0_i32_0 = arith.constant 0 : i32
    %c0_i32_1 = arith.constant 0 : i32
    return %c0_i32, %c0_i32_0 : i32, i32
  }
  func.func @transform_12(%arg0: i32) -> (i32, i32, i32) {
    %c0_i32 = arith.constant 0 : i32
    %c0_i32_0 = arith.constant 0 : i32
    %c0_i32_1 = arith.constant 0 : i32
    return %arg0, %c0_i32, %c0_i32_0 : i32, i32, i32
  }
}

</mosaic_0001>

<bundles_post_ra>
// kernel: tpu_custom_call.1
= control target key start
LH: loop header
LB: loop body
LE: loop exit
PB: predicated region body
PF: predicated region fallthrough
CT: control target
= control target key end

     0   :  { %s1991_s0 = inlined_call_operand.vmem [shape: f32[2,8,32], index: 0, kind: input, shape index: {}]   ;;  %s1992_s1 = inlined_call_operand.vmem [shape: f32[1,32], index: 1, kind: input, shape index: {}]   ;;  %s1993_s2 = inlined_call_operand.vmem [shape: f32[1,32], index: 2, kind: input, shape index: {}]   ;;  %s1994_s3 = inlined_call_operand.vmem [shape: bf16[32,96], index: 3, kind: input, shape index: {}]   ;;  %s1995_s4 = inlined_call_operand.vmem [shape: bf16[32,32], index: 4, kind: input, shape index: {}]   ;;  %s1996_s5 = inlined_call_operand.vmem [shape: f32[1,32], index: 5, kind: input, shape index: {}]   ;;  %s1997_s6 = inlined_call_operand.vmem [shape: f32[1,32], index: 6, kind: input, shape index: {}]   ;;  %s1998_s7 = inlined_call_operand.vmem [shape: f32[1,32], index: 7, kind: input, shape index: {}]   ;;  %s1999_s8 = inlined_call_operand.vmem [shape: bf16[32,128], index: 8, kind: input, shape index: {}]   ;;  %s2000_s9 = inlined_call_operand.vmem [shape: f32[1,128], index: 9, kind: input, shape index: {}]   ;;  %s2001_s10 = inlined_call_operand.vmem [shape: bf16[128,32], index: 10, kind: input, shape index: {}]   ;;  %s2002_s11 = inlined_call_operand.vmem [shape: f32[1,32], index: 11, kind: input, shape index: {}]   ;;  %s2003_s12 = inlined_call_operand.hbm [shape: f32[2,8,32], index: 12, kind: output, shape index: {}]  }
   0x1   :  { %2004 = sst [smem:[#allocation6_spill]] %s1991_s0 }
   0x2   :  { %2005 = sst [smem:[#allocation7_spill]] %s1992_s1 }
   0x3   :  { %17 = vsyncpa [#allocation4], 0 }
   0x4   :  { %19 = vsyncpa [#allocation4 + $0x1], 0  ;;  %s1729_s21 = smov 0   ;;  %s1731_s22 = smov 0  }
   0x5   :  { %s1733_s23 = smov 0   ;;  %s1735_s24 = smov 0  }
   0x6 LB: > { %s1750_s25 = sadd.s32 4294967295, %s1645_s24   ;;  %s1324_s26 = sadd.s32 4294967294, %s1645_s24   ;;  %s1645_s24 = sphi %s1735_s24, %s2013_s24   ;;  %s1641_s23 = sphi %s1733_s23, %s2012_s23   ;;  %s1637_s22 = sphi %s1731_s22, %s2011_s22   ;;  %s1633_s21 = sphi %s1729_s21, %s2010_s21  }
   0x7   : > { %s1754_s27 = sadd.s32 1, %s1645_s24   ;;  %s289_s28 = sadd.s32 1, %s1641_s23 }
   0x8   : > { %s286_s29 = ssub.s32 %s1645_s24, %s1754_s27  ;;  %p299_p0 = scmp.ne.s32.totalorder %s1641_s23, %s1637_s22 }
   0x9   : > { %p287_p1 = scmp.eq.s32.totalorder %s286_s29, 0  ;;  %p300_p2 = scmp.eq.s32.totalorder %s1750_s25, 1 }
   0xa   : > { %p305_p3 = scmp.ne.s32.totalorder %s1637_s22, %s1633_s21  ;;  %p306_p4 = scmp.eq.s32.totalorder %s1324_s26, 1 }
   0xb   : > { %s1765_s30 = scalar_select %p287_p1, %s1641_s23, %s289_s28  }
   0xc   : > { %p1767_p5 = por %p300_p2, %p299_p0  ;;  %p1771_p6 = por %p306_p4, %p305_p3 }
   0xd   : > { %p1327_p7 = scmp.ge.s32.totalorder %s1645_s24, 1  ;;  %p364_p8 = scmp.lt.s32.totalorder %s1645_s24, 3 }
   0xf   : > { %p365_p9 = pnand %p1327_p7, %p364_p8 }
  0x10   : > { %p405_p10 = scmp.lt.s32.totalorder (!%p365_p9), %s1750_s25, 1  ;;  %vm413_vm0 = vcmask (!%p365_p9), 261120   ;;  %s2008_s0 = sld [smem:[#allocation6_spill]] (!%p365_p9)  ;;  %v1547_v7 = vld [vmem:[%s1994_s3] sm:$0xff] (!%p365_p9)   ;;  %v1647_v8 = vmov (!%p365_p9), 0.0   ;;  %vm1648_vm1 = vmmov (!%p365_p9), 0  }
  0x11   : > { %368 = sbr.rel (%p365_p9) target bundleno = 2601 (0xa29), region = 68  ;;  %1400 = vmatprep.subr.bf16.mxu0 (!%p365_p9), %v1647_v8  ;;  %1404 = vmatprep.mubr.msk.bf16.mxu0 (!%p365_p9), %vm1648_vm1, %v1647_v8  ;;  %v1548_v9 = vld [vmem:[%s1994_s3 + $0x8] sm:$0xff] (!%p365_p9)   ;;  %s2009_s1 = sld [smem:[#allocation7_spill]] (!%p365_p9)  ;;  %v1331_v16 = vld [vmem:[%s1993_s2] ss:$0 sm:$0xff] (!%p365_p9)  ;;  %vm508_vm2 = vcmask (!%p365_p9), 64512  }
  0x12   : > { %1401 = vmatpush3.bf16.msra.mxu0 (!%p365_p9), %v1547_v7  ;;  %1420 = vmatprep.subr.bf16.mxu1 (!%p365_p9), %v1647_v8  ;;  %s1650_s20 = smov (!%p365_p9), 120   ;;  %s1651_s26 = smov (!%p365_p9), 88   ;;  %vm572_vm3 = vcmask (!%p365_p9), 1043456   ;;  %vm732_vm4 = vcmask (!%p365_p9), 130112   ;;  %vm848_vm5 = vcmask (!%p365_p9), 195712   ;;  %vm964_vm6 = vcmask (!%p365_p9), 261312  }
  0x13   : > { %1402 = vmatprep.subr.bf16.mxu0 (!%p365_p9), %v1647_v8  ;;  %1422 = vmatprep.mubr.msk.bf16.mxu1 (!%p365_p9), %vm1648_vm1, %v1647_v8  ;;  %s1652_s28 = smov (!%p365_p9), 80   ;;  %s1653_s29 = smov (!%p365_p9), 112  }
  0x14   : > { %s1656_s17 = smov (!%p365_p9), 64   ;;  %s1657_s18 = smov (!%p365_p9), 56  }
  0x16   : > { %1403 = vmatpush3.bf16.msra.mxu0 (!%p365_p9), %v1548_v9 }
  0x17   : > { %1408 = vmatprep.subr.bf16.mxu0 (!%p365_p9), %v1647_v8  ;;  %v1330_v14 = vld [vmem:[%s2009_s1] ss:$0 sm:$0xff] (!%p365_p9) }
  0x18   : > { %s406_s15 = scalar_select %p405_p10, %s1750_s25, 1 }
  0x1a   : > { %s1329_s16 = sshll.u32 %s406_s15, 3  ;;  %s1654_s15 = smov 72  }
  0x1b   : > { %s408_s19 = scalar_lea.vmem %s2008_s0, %s1329_s16  ;;  %s1655_s16 = smov 104  }
  0x1c   : > { %v1782_v0 = vld [vmem:[%s408_s19] sm:$0xff]  ;;  %s1649_s19 = smov 96  }
  0x1d   : > { %v414_v1 = vsel %vm413_vm0, %v1782_v0, 0.0 }
  0x1e   : > { %415 = vadd.xlane.f32.xlu0 %v414_v1 }
  0xab   : > { %v416_v2 = vpop.xlane.xlu0 %415 }
  0xac   : > { %v418_v3 = vmul.f32 0.03125, %v416_v2 }
  0xae   : > { %v419_v4 = vsub.f32 %v1782_v0, %v418_v3 }
  0xb0   : > { %v420_v5 = vmul.f32 %v419_v4, %v419_v4 }
  0xb2   : > { %v421_v6 = vsel %vm413_vm0, %v420_v5, 0.0 }
  0xb3   : > { %422 = vadd.xlane.f32.xlu0 %v421_v6 }
 0x140   : > { %v423_v10 = vpop.xlane.xlu0 %422 }
 0x141   : > { %v424_v11 = vmul.f32 0.03125, %v423_v10 }
 0x143   : > { %v425_v12 = vadd.f32 1e-05, %v424_v11 }
 0x145   : > { %1561 = vrsqrt.f32 %v425_v12 }
 0x14f   : > { %v1562_v13 = vpop.eup %1561 }
 0x150   : > { %v427_v15 = vmul.f32 %v1562_v13, %v419_v4 }
 0x152   : > { %v434_v17 = vmul.f32 %v1330_v14, %v427_v15 }
 0x154   : > { %v441_v18 = vadd.f32 %v1331_v16, %v434_v17 }
 0x156   : > { %v442_v19 = vpack.c.bf16 %v441_v18, %v441_v18 }
 0x158   : > { %1405 = vmatmul.mubr.msk.bf16.vlgmr.msra.gmra.mrb[0].mxu0 %vm413_vm0, %v442_v19 }
 0x159   : > { %1410 = vmatprep.mubr.msk.bf16.mxu0 %vm1648_vm1, %v1647_v8 }
 0x22b   : > { %v496_v20 = vpop.f32.mrb[0].mxu0 }
 0x22c   : > { %v502_v21 = vmul.f32 0.35355338, %v496_v20  ;;  %v1811_v22 = vpack.c.bf16 %v496_v20, %v496_v20  ;;  %v1406_v23 = vpop.f32.mrb[1].mxu0 }
 0x22d   : > { %v499_v24 = vpop.f32.mrb[2].mxu0 }
 0x22e   : > { %v503_v25 = vpack.c.bf16 %v502_v21, %v502_v21  ;;  %506 = vrot.lane.b32.xlu1 %v1811_v22, %s1649_s19  ;;  %v1407_v26 = vpop.f32.mrb[3].mxu0  ;;  %s1658_s19 = smov 48  }
 0x230   : > { %618 = vrot.lane.b32.xlu0 %v503_v25, %s1650_s20  ;;  %s1659_s20 = smov 40  }
 0x232   : > { %620 = vrot.lane.b32.xlu1 %v1811_v22, %s1651_s26  ;;  %s1660_s26 = smov 8  }
 0x236   : > { %736 = vrot.lane.b32.xlu1 %v1811_v22, %s1652_s28  ;;  %s1663_s28 = smov [#allocation3]  }
 0x23a   : > { %734 = vrot.lane.b32.xlu1 %v503_v25, %s1653_s29  ;;  %s1587_s29 = sshll.u32 %s1663_s28, 4  ;;  %s1588_s29 = int_to_ptr.vmem [resolvable:$false] %s1587_s29 }
 0x23b   : > { %s1589_s1 = scalar_lea.vmem %s1588_s29, 256 }
 0x23e   : > { %852 = vrot.lane.b32.xlu1 %v1811_v22, %s1654_s15  ;;  %s1363_s15 = sshll.u32 %s1750_s25, 7 }
 0x23f   : > { %s1948_s0 = scalar_lea.hbm %s2003_s12, %s1363_s15 }
 0x242   : > { %850 = vrot.lane.b32.xlu1 %v503_v25, %s1655_s16 }
 0x2a0   : > { %v507_v27 = vpop.permute.xlu1 %506 }
 0x2a1   : > { %v513_v28 = vsel %vm508_vm2, %v507_v27, 0 }
 0x2a2   : > { %1409 = vmatpush3.bf16.xpose.msra.mxu0 %v513_v28  ;;  %v619_v32 = vpop.permute.xlu0 %618 }
 0x2a3   : > { %1414 = vmatprep.subr.bf16.mxu0 %v1647_v8 }
 0x2a4   : > { %v621_v29 = vpop.permute.xlu1 %620 }
 0x2a5   : > { %v626_v30 = vsel %vm508_vm2, %v621_v29, 0 }
 0x2a6   : > { %1421 = vmatpush3.bf16.xpose.msra.mxu1 %v626_v30 }
 0x2a7   : > { %1432 = vmatprep.subr.bf16.mxu1 %v1647_v8 }
 0x2a8   : > { %v737_v31 = vpop.permute.xlu1 %736 }
 0x2a9   : > { %1411 = vmatmul.mubr.msk.bf16.vlgmr.msra.gmra.mrb[4].mxu0 %vm508_vm2, %v503_v25  ;;  %v742_v34 = vsel %vm508_vm2, %v737_v31, 0 }
 0x2aa   : > { %1416 = vmatprep.mubr.msk.bf16.mxu0 %vm1648_vm1, %v1647_v8 }
 0x2ac   : > { %v735_v33 = vpop.permute.xlu1 %734 }
 0x2ad   : > { %1423 = vmatmul.mubr.msk.bf16.vlgmr.msra.gmra.mrb[0].mxu1 %vm508_vm2, %v619_v32 }
 0x2ae   : > { %1433 = vmatpush3.bf16.xpose.msra.mxu1 %v742_v34  ;;  %1434 = vmatprep.mubr.msk.bf16.mxu1 %vm1648_vm1, %v1647_v8 }
 0x2af   : > { %1444 = vmatprep.subr.bf16.mxu1 %v1647_v8 }
 0x2b0   : > { %v853_v35 = vpop.permute.xlu1 %852 }
 0x2b1   : > { %v858_v36 = vsel %vm508_vm2, %v853_v35, 0 }
 0x2b4   : > { %v851_v37 = vpop.permute.xlu1 %850 }
 0x2b5   : > { %1435 = vmatmul.mubr.msk.bf16.vlgmr.msra.gmra.mrb[4].mxu1 %vm508_vm2, %v735_v33 }
 0x2b6   : > { %1445 = vmatpush3.bf16.xpose.msra.mxu1 %v858_v36  ;;  %1446 = vmatprep.mubr.msk.bf16.mxu1 %vm1648_vm1, %v1647_v8 }
 0x2b7   : > { %1456 = vmatprep.subr.bf16.mxu1 %v1647_v8 }
 0x2bd   : > { %1447 = vmatmul.mubr.msk.bf16.vlgmr.msra.gmra.mrb[8].mxu1 %vm508_vm2, %v851_v37 }
 0x2be   : > { %1460 = vmatprep.mubr.msk.bf16.mxu1 %vm1648_vm1, %v1647_v8 }
 0x37c   : > { %v549_v38 = vpop.f32.mrb[4].mxu0 }
 0x37d   : > { %v1412_v39 = vpop.f32.mrb[5].mxu0  ;;  %v555_v40 = vsel %vm508_vm2, %v549_v38, -inf }
 0x37e   : > { %556 = vmax.xlane.f32.xlu1 %v555_v40  ;;  %v552_v41 = vpop.f32.mrb[6].mxu0 }
 0x37f   : > { %v1413_v42 = vpop.f32.mrb[7].mxu0 }
 0x380   : > { %v662_v43 = vpop.f32.mrb[0].mxu1 }
 0x381   : > { %v1424_v44 = vpop.f32.mrb[1].mxu1  ;;  %v668_v45 = vsel %vm508_vm2, %v662_v43, -inf }
 0x382   : > { %669 = vmax.xlane.f32.xlu0 %v668_v45  ;;  %v665_v46 = vpop.f32.mrb[2].mxu1 }
 0x383   : > { %v1425_v47 = vpop.f32.mrb[3].mxu1 }
 0x388   : > { %v778_v48 = vpop.f32.mrb[4].mxu1 }
 0x389   : > { %v1436_v49 = vpop.f32.mrb[5].mxu1  ;;  %v784_v50 = vsel %vm508_vm2, %v778_v48, -inf }
 0x38a   : > { %v781_v51 = vpop.f32.mrb[6].mxu1  ;;  %785 = vmax.xlane.f32.xlu1 %v784_v50  ;;  %v1550_v49 = vld [vmem:[%s1995_s4 + $0x8] sm:$0xff]  }
 0x38b   : > { %v1437_v52 = vpop.f32.mrb[7].mxu1 }
 0x390   : > { %v894_v53 = vpop.f32.mrb[8].mxu1 }
 0x391   : > { %v1448_v54 = vpop.f32.mrb[9].mxu1  ;;  %v900_v55 = vsel %vm508_vm2, %v894_v53, -inf }
 0x392   : > { %901 = vmax.xlane.f32.xlu0 %v900_v55  ;;  %v897_v56 = vpop.f32.mrb[10].mxu1 }
 0x393   : > { %v1449_v57 = vpop.f32.mrb[11].mxu1 }
 0x40b   : > { %v557_v58 = vpop.xlane.xlu1 %556 }
 0x40c   : > { %v558_v59 = vsub.f32 %v549_v38, %v557_v58 }
 0x40e   : > { %v559_v60 = vmul.f32 1.442695, %v558_v59 }
 0x40f   : > { %v670_v61 = vpop.xlane.xlu0 %669 }
 0x410   : > { %1563 = vpow2.f32 %v559_v60  ;;  %v671_v62 = vsub.f32 %v662_v43, %v670_v61 }
 0x412   : > { %v672_v63 = vmul.f32 1.442695, %v671_v62 }
 0x414   : > { %1565 = vpow2.f32 %v672_v63 }
 0x417   : > { %v786_v11 = vpop.xlane.xlu1 %785 }
 0x418   : > { %v787_v12 = vsub.f32 %v778_v48, %v786_v11  ;;  %v1549_v48 = vld [vmem:[%s1995_s4] sm:$0xff]  }
 0x419   : > { %1457 = vmatpush3.bf16.msra.mxu1 %v1549_v48 }
 0x41a   : > { %v1564_v1 = vpop.eup %1563  ;;  %v788_v13 = vmul.f32 1.442695, %v787_v12  ;;  %1458 = vmatprep.subr.bf16.mxu1 %v1647_v8 }
 0x41b   : > { %v561_v2 = vsel %vm508_vm2, %v1564_v1, 0.0 }
 0x41c   : > { %562 = vadd.xlane.f32.xlu1 %v561_v2 }
 0x41d   : > { %1459 = vmatpush3.bf16.msra.mxu1 %v1550_v49 }
 0x41e   : > { %v1566_v3 = vpop.eup %1565  ;;  %1472 = vmatprep.subr.bf16.mxu1 %v1647_v8 }
 0x41f   : > { %v902_v4 = vpop.xlane.xlu0 %901  ;;  %v674_v5 = vsel %vm508_vm2, %v1566_v3, 0.0 }
 0x420   : > { %v903_v6 = vsub.f32 %v894_v53, %v902_v4  ;;  %675 = vadd.xlane.f32.xlu0 %v674_v5 }
 0x422   : > { %v904_v7 = vmul.f32 1.442695, %v903_v6 }
 0x424   : > { %1567 = vpow2.f32 %v904_v7 }
 0x425   : > { %1569 = vpow2.f32 %v788_v13 }
 0x42d   : > { %567 = vrot.lane.b32.xlu1 %v1811_v22, %s1656_s17  ;;  %s1661_s17 = smov 16  }
 0x42e   : > { %v1568_v9 = vpop.eup %1567 }
 0x42f   : > { %v906_v10 = vsel %vm508_vm2, %v1568_v9, 0.0  ;;  %v1570_v14 = vpop.eup %1569 }
 0x430   : > { %907 = vadd.xlane.f32.xlu0 %v906_v10  ;;  %v790_v15 = vsel %vm508_vm2, %v1570_v14, 0.0 }
 0x446   : > { %680 = vrot.lane.b32.xlu0 %v1811_v22, %s1657_s18  ;;  %s1662_s18 = smov 24  }
 0x451   : > { %791 = vadd.xlane.f32.xlu1 %v790_v15  ;;  %v1553_v15 = vld [vmem:[%s2001_s10] sm:$0xff]  }
 0x462   : > { %796 = vrot.lane.b32.xlu1 %v1811_v22, %s1658_s19 }
 0x466   : > { %912 = vrot.lane.b32.xlu1 %v1811_v22, %s1659_s20  ;;  %s402_s20 = sand.u32 1, %s1637_s22  }
 0x467   : > { %s1252_s25 = scalar_lea.sflag [#allocation4], %s402_s20 }
 0x4a9   : > { %v563_v16 = vpop.xlane.xlu1 %562 }
 0x4aa   : > { %1571 = vrcp.f32 %v563_v16  ;;  %v1554_v16 = vld [vmem:[%s2001_s10 + $0x8] sm:$0xff]  }
 0x4ad   : > { %v568_v17 = vpop.permute.xlu1 %567  ;;  %v676_v19 = vpop.xlane.xlu0 %675 }
 0x4ae   : > { %v574_v18 = vsel %vm572_vm3, %v568_v17, 0  ;;  %1573 = vrcp.f32 %v676_v19  ;;  %v1555_v17 = vld [vmem:[%s2001_s10 + $0x10] sm:$0xff]  }
 0x4af   : > { %1415 = vmatpush3.bf16.msra.mxu0 %v574_v18 }
 0x4b0   : > { %1426 = vmatprep.subr.bf16.mxu0 %v1647_v8 }
 0x4b4   : > { %v1572_v20 = vpop.eup %1571 }
 0x4b5   : > { %v565_v21 = vmul.f32 %v1572_v20, %v1564_v1  ;;  %v1346_v1 = vld [vmem:[%s1996_s5] ss:$0 sm:$0xff] }
 0x4b7   : > { %v566_v23 = vpack.c.bf16 %v565_v21, %v565_v21 }
 0x4b8   : > { %v1574_v22 = vpop.eup %1573 }
 0x4b9   : > { %1417 = vmatmul.mubr.msk.bf16.vlgmr.msra.gmra.mrb[8].mxu0 %vm508_vm2, %v566_v23  ;;  %v678_v25 = vmul.f32 %v1574_v22, %v1566_v3  ;;  %v1347_v23 = vld [vmem:[%s1997_s6] ss:$0 sm:$0xff] }
 0x4ba   : > { %1428 = vmatprep.mubr.msk.bf16.mxu0 %vm1648_vm1, %v1647_v8 }
 0x4bb   : > { %v679_v28 = vpack.c.bf16 %v678_v25, %v678_v25 }
 0x4bd   : > { %v908_v24 = vpop.xlane.xlu0 %907 }
 0x4c1   : > { %v681_v26 = vpop.permute.xlu0 %680 }
 0x4c2   : > { %v686_v27 = vsel %vm572_vm3, %v681_v26, 0 }
 0x4c3   : > { %1427 = vmatpush3.bf16.msra.mxu0 %v686_v27 }
 0x4c4   : > { %1438 = vmatprep.subr.bf16.mxu0 %v1647_v8 }
 0x4c6   : > { %1429 = vmatmul.mubr.msk.bf16.vlgmr.msra.gmra.mrb[12].mxu0 %vm508_vm2, %v679_v28  ;;  %v1556_v28 = vld [vmem:[%s2001_s10 + $0x18] sm:$0xff]  }
 0x4c7   : > { %1440 = vmatprep.mubr.msk.bf16.mxu0 %vm1648_vm1, %v1647_v8 }
 0x4de   : > { %v792_v29 = vpop.xlane.xlu1 %791 }
 0x4df   : > { %1575 = vrcp.f32 %v792_v29  ;;  %v1557_v29 = vld [vmem:[%s2001_s10 + $0x20] sm:$0xff]  }
 0x4e0   : > { %1577 = vrcp.f32 %v908_v24  ;;  %v1348_v24 = vld [vmem:[%s1998_s7] ss:$0 sm:$0xff] }
 0x4e2   : > { %v797_v30 = vpop.permute.xlu1 %796 }
 0x4e3   : > { %v802_v31 = vsel %vm572_vm3, %v797_v30, 0  ;;  %v1558_v30 = vld [vmem:[%s2001_s10 + $0x28] sm:$0xff]  }
 0x4e4   : > { %1439 = vmatpush3.bf16.msra.mxu0 %v802_v31  ;;  %v1559_v31 = vld [vmem:[%s2001_s10 + $0x30] sm:$0xff]  }
 0x4e5   : > { %1450 = vmatprep.subr.bf16.mxu0 %v1647_v8 }
 0x4e6   : > { %v913_v34 = vpop.permute.xlu1 %912 }
 0x4e7   : > { %v918_v37 = vsel %vm572_vm3, %v913_v34, 0 }
 0x4e9   : > { %v1576_v32 = vpop.eup %1575 }
 0x4ea   : > { %v794_v33 = vmul.f32 %v1576_v32, %v1570_v14  ;;  %v1578_v36 = vpop.eup %1577  ;;  %v1552_v14 = vld [vmem:[%s1999_s8 + $0x8] sm:$0xff]   ;;  %v1560_v32 = vld [vmem:[%s2001_s10 + $0x38] sm:$0xff]  }
 0x4eb   : > { %v910_v38 = vmul.f32 %v1578_v36, %v1568_v9 }
 0x4ec   : > { %v795_v35 = vpack.c.bf16 %v794_v33, %v794_v33  ;;  %v1349_v33 = vld [vmem:[%s2000_s9] ss:$0 sm:$0xff] }
 0x4ed   : > { %v911_v39 = vpack.c.bf16 %v910_v38, %v910_v38 }
 0x4ee   : > { %1441 = vmatmul.mubr.msk.bf16.vlgmr.msra.gmra.mrb[16].mxu0 %vm508_vm2, %v795_v35 }
 0x4ef   : > { %1451 = vmatpush3.bf16.msra.mxu0 %v918_v37  ;;  %1452 = vmatprep.mubr.msk.bf16.mxu0 %vm1648_vm1, %v1647_v8 }
 0x4f0   : > { %1464 = vmatprep.subr.bf16.mxu0 %v1647_v8 }
 0x4f6   : > { %1453 = vmatmul.mubr.msk.bf16.vlgmr.msra.gmra.mrb[20].mxu0 %vm508_vm2, %v911_v39 }
 0x4f7   : > { %1468 = vmatprep.mubr.msk.bf16.mxu0 %vm1648_vm1, %v1647_v8 }
 0x58c   : > { %v610_v40 = vpop.f32.mrb[8].mxu0 }
 0x58d   : > { %616 = vst.msk [vmem:[#allocation2] sm:$0xff] %vm508_vm2, %v610_v40  ;;  %v1418_v41 = vpop.f32.mrb[9].mxu0 }
 0x58e   : > { %v613_v42 = vpop.f32.mrb[10].mxu0 }
 0x58f   : > { %v1419_v43 = vpop.f32.mrb[11].mxu0 }
 0x599   : > { %v722_v44 = vpop.f32.mrb[12].mxu0 }
 0x59a   : > { %729 = vrot.lane.b32.xlu0 %v722_v44, %s1660_s26  ;;  %v1430_v45 = vpop.f32.mrb[13].mxu0  ;;  %s1328_s26 = sshll.u32 %s402_s20, 3  ;;  %v1353_v44 = vld [vmem:[%s2002_s11] ss:$0 sm:$0xff] }
 0x59b   : > { %v725_v46 = vpop.f32.mrb[14].mxu0  ;;  %s404_s16 = scalar_lea.vmem [#allocation3], %s1328_s26 }
 0x59c   : > { %v1431_v47 = vpop.f32.mrb[15].mxu0 }
 0x5c1   : > { %v838_v50 = vpop.f32.mrb[16].mxu0 }
 0x5c2   : > { %845 = vrot.lane.b32.xlu1 %v838_v50, %s1661_s17  ;;  %v1442_v51 = vpop.f32.mrb[17].mxu0  ;;  %s1265_s17 = sshll.u32 %s404_s16, 4  ;;  %s1950_s17 = int_to_ptr.vmem [resolvable:$true] %s1265_s17 }
 0x5c3   : > { %v841_v52 = vpop.f32.mrb[18].mxu0  ;;  %s1583_s26 = scalar_lea.vmem %s1950_s17, 128  ;;  %p1590_p0 = scmp.lt.s32.totalorder %s1950_s17, %s1588_s29 }
 0x5c4   : > { %v1443_v53 = vpop.f32.mrb[19].mxu0  ;;  %p1584_p11 = scmp.ne.s32.totalorder %s1950_s17, %s1583_s26  ;;  %p1591_p1 = scmp.lt.s32.totalorder %s1589_s1, %s1583_s26 }
 0x5c6   : > { %p1585_p12 = pnand %p1584_p11, %p1767_p5  ;;  %p1592_p2 = por %p1591_p1, %p1590_p0 }
 0x5c8   : > { %p1586_p13 = pneg %p1585_p12 }
 0x5c9   : > { %v954_v54 = vpop.f32.mrb[20].mxu0 }
 0x5ca   : > { %961 = vrot.lane.b32.xlu0 %v954_v54, %s1662_s18  ;;  %v1454_v55 = vpop.f32.mrb[21].mxu0  ;;  %p1593_p3 = pnand %p1592_p2, %p1586_p13 }
 0x5cb   : > { %v957_v56 = vpop.f32.mrb[22].mxu0 }
 0x5cc   : > { %v1455_v57 = vpop.f32.mrb[23].mxu0 }
 0x60c   : > { %v730_v58 = vpop.permute.xlu0 %729 }
 0x60d   : > { %733 = vst.msk [vmem:[#allocation2] sm:$0xff] %vm732_vm4, %v730_v58 }
 0x634   : > { %v846_v59 = vpop.permute.xlu1 %845 }
 0x635   : > { %849 = vst.msk [vmem:[#allocation2] sm:$0xff] %vm848_vm5, %v846_v59 }
 0x63c   : > { %v962_v60 = vpop.permute.xlu0 %961 }
 0x63d   : > { %965 = vst.msk [vmem:[#allocation2] sm:$0xff] %vm964_vm6, %v962_v60 }
 0x644   : > { %v966_v61 = vld [vmem:[#allocation2] sm:$0xff] }
 0x645   : > { %v967_v62 = vpack.c.bf16 %v966_v61, %v966_v61 }
 0x647   : > { %1461 = vmatmul.mubr.msk.bf16.vlgmr.msra.gmra.mrb[12].mxu1 %vm413_vm0, %v967_v62 }
 0x648   : > { %1488 = vmatprep.mubr.msk.bf16.mxu1 %vm1648_vm1, %v1647_v8  ;;  %1473 = vmatpush3.bf16.msra.mxu1 %v1553_v15 }
 0x649   : > { %1474 = vmatprep.subr.bf16.mxu1 %v1647_v8 }
 0x64c   : > { %1475 = vmatpush3.bf16.msra.mxu1 %v1554_v16 }
 0x64d   : > { %1476 = vmatprep.subr.bf16.mxu1 %v1647_v8 }
 0x650   : > { %1477 = vmatpush3.bf16.msra.mxu1 %v1555_v17 }
 0x651   : > { %1478 = vmatprep.subr.bf16.mxu1 %v1647_v8 }
 0x654   : > { %1479 = vmatpush3.bf16.msra.mxu1 %v1556_v28 }
 0x655   : > { %1480 = vmatprep.subr.bf16.mxu1 %v1647_v8 }
 0x658   : > { %1481 = vmatpush3.bf16.msra.mxu1 %v1557_v29 }
 0x659   : > { %1482 = vmatprep.subr.bf16.mxu1 %v1647_v8 }
 0x65c   : > { %1483 = vmatpush3.bf16.msra.mxu1 %v1558_v30 }
 0x65d   : > { %1484 = vmatprep.subr.bf16.mxu1 %v1647_v8 }
 0x660   : > { %1485 = vmatpush3.bf16.msra.mxu1 %v1559_v31 }
 0x661   : > { %1486 = vmatprep.subr.bf16.mxu1 %v1647_v8 }
 0x664   : > { %1487 = vmatpush3.bf16.msra.mxu1 %v1560_v32 }
 0x71a   : > { %v1021_v63 = vpop.f32.mrb[12].mxu1 }
 0x71b   : > { %v1027_v2 = vadd.f32 %v1021_v63, %v1782_v0  ;;  %v1462_v3 = vpop.f32.mrb[13].mxu1  ;;  %v1551_v0 = vld [vmem:[%s1999_s8] sm:$0xff]  }
 0x71c   : > { %v1024_v4 = vpop.f32.mrb[14].mxu1  ;;  %1465 = vmatpush3.bf16.msra.mxu0 %v1551_v0 }
 0x71d   : > { %v1885_v5 = vadd.f32 %v1346_v1, %v1027_v2  ;;  %v1463_v6 = vpop.f32.mrb[15].mxu1  ;;  %1466 = vmatprep.subr.bf16.mxu0 %v1647_v8 }
 0x71f   : > { %v1038_v7 = vsel %vm413_vm0, %v1885_v5, 0.0 }
 0x720   : > { %1039 = vadd.xlane.f32.xlu1 %v1038_v7  ;;  %1467 = vmatpush3.bf16.msra.mxu0 %v1552_v14 }
 0x7ad   : > { %v1040_v9 = vpop.xlane.xlu1 %1039 }
 0x7ae   : > { %v1041_v10 = vmul.f32 0.03125, %v1040_v9 }
 0x7b0   : > { %v1042_v11 = vsub.f32 %v1885_v5, %v1041_v10 }
 0x7b2   : > { %v1043_v12 = vmul.f32 %v1042_v11, %v1042_v11 }
 0x7b4   : > { %v1044_v13 = vsel %vm413_vm0, %v1043_v12, 0.0 }
 0x7b5   : > { %1045 = vadd.xlane.f32.xlu0 %v1044_v13 }
 0x842   : > { %v1046_v18 = vpop.xlane.xlu0 %1045 }
 0x843   : > { %v1047_v19 = vmul.f32 0.03125, %v1046_v18 }
 0x845   : > { %v1048_v20 = vadd.f32 1e-05, %v1047_v19 }
 0x847   : > { %1579 = vrsqrt.f32 %v1048_v20 }
 0x851   : > { %v1580_v21 = vpop.eup %1579 }
 0x852   : > { %v1050_v22 = vmul.f32 %v1580_v21, %v1042_v11 }
 0x854   : > { %v1057_v25 = vmul.f32 %v1347_v23, %v1050_v22 }
 0x856   : > { %v1064_v26 = vadd.f32 %v1348_v24, %v1057_v25 }
 0x858   : > { %v1065_v27 = vpack.c.bf16 %v1064_v26, %v1064_v26 }
 0x85a   : > { %1469 = vmatmul.mubr.msk.bf16.vlgmr.msra.gmra.mrb[24].mxu0 %vm413_vm0, %v1065_v27 }
 0x92d   : > { %v1126_v34 = vpop.f32.mrb[24].mxu0 }
 0x92e   : > { %v1127_v35 = vadd.f32 %v1349_v33, %v1126_v34  ;;  %v1470_v36 = vpop.f32.mrb[25].mxu0 }
 0x92f   : > { %v1129_v37 = vpop.f32.mrb[26].mxu0 }
 0x930   : > { %v1133_v38 = vmul.f32 0.70710677, %v1127_v35  ;;  %v1471_v39 = vpop.f32.mrb[27].mxu0  ;;  %v1132_v8 = vmul.f32 0.5, %v1127_v35 }
 0x932   : > { %1581 = verf.f32 %v1133_v38 }
 0x93c   : > { %v1582_v40 = vpop.eup %1581 }
 0x93d   : > { %v1135_v41 = vadd.f32 1.0, %v1582_v40 }
 0x93f   : > { %v1136_v42 = vmul.f32 %v1135_v41, %v1132_v8 }
 0x941   : > { %v1137_v43 = vpack.c.bf16 %v1136_v42, %v1136_v42 }
 0x943   : > { %1489 = vmatmul.mubr.bf16.vlgmr.msra.gmra.mrb[16].mxu1 %v1137_v43 }
 0xa16   : > { %v1243_v45 = vpop.f32.mrb[16].mxu1 }
 0xa17   : > { %v1244_v46 = vadd.f32 %v1353_v44, %v1243_v45  ;;  %v1490_v47 = vpop.f32.mrb[17].mxu1 }
 0xa18   : > { %v1246_v48 = vpop.f32.mrb[18].mxu1 }
 0xa19   : > { %v1249_v49 = vadd.f32 %v1244_v46, %v1885_v5  ;;  %v1491_v50 = vpop.f32.mrb[19].mxu1 }
 0xa1b   : > { %1250 = vst.msk [vmem:[%s404_s16] sm:$0xff] %vm413_vm0, %v1249_v49 }
 0xa1c   : > { %1596 = shalt.err (!%p1593_p3)
}
 0xa1d   : > { %s1597_s20 = scalar_lea.hbm %s1948_s0, 128  ;;  %s1601_s18 = scalar_lea.hbm %s2003_s12, 256 }
 0xa1e   : > { %p1598_p4 = scmp.ne.s32.totalorder %s1948_s0, %s1597_s20  ;;  %p1602_p9 = scmp.lt.u32.totalorder %s1948_s0, %s2003_s12 }
 0xa1f   : > { %p1603_p10 = scmp.lt.u32.totalorder %s1601_s18, %s1597_s20  ;;  %p1605_p12 = scmp.lt.u32.totalorder %s1597_s20, %s1948_s0 }
 0xa20   : > { %p1599_p7 = pnand %p1598_p4, %p1767_p5 }
 0xa21   : > { %p1604_p11 = por %p1603_p10, %p1602_p9 }
 0xa22   : > { %p1600_p8 = pneg %p1599_p7 }
 0xa23   : > { %p1606_p13 = por %p1605_p12, %p1604_p11 }
 0xa25   : > { %p1607_p0 = pnand %p1606_p13, %p1600_p8 }
 0xa27   : > { %1610 = shalt.err (!%p1607_p0)
}
 0xa28   : > { %1492 = dma.vmem_to_hbm [thread:$0]  (%p1767_p5), %s1950_s17, 128, %s1948_s0, %s1252_s25  }
 0xa29 PF: > { %p1498_p1 = scmp.ge.s32.totalorder %s1645_s24, 2  ;;  %s1277_s1 = sand.u32 1, %s1633_s21  }
 0xa2a   : > { %s1278_s26 = scalar_lea.sflag [#allocation4], %s1277_s1 }
 0xa2b   : > { %p1495_p2 = pnand %p1498_p1, %p1771_p6 }
 0xa2d   : > { %1628 = dma.done.wait (!%p1495_p2), %s1278_s26, 128  }
 0xa2e   : > { %1630 = vsyncadd (!%p1495_p2), %s1278_s26, 4294967168  ;;  %p22_p3 = scmp.ge.s32.totalorder %s1754_s27, 4   ;;  %s2010_s21 = smov %s1637_s22 }
 0xa2f   : > { %s2011_s22 = smov %s1641_s23  ;;  %s2012_s23 = smov %s1765_s30 }
 0xa30   : > { %s2013_s24 = smov %s1754_s27  ;;  %24 = sbr.rel (!%p22_p3) target bundleno = 6 (0x6), region = 103 }
 0xa37   :  { %1283 = vsyncpa [#allocation4], 1 }
 0xa38   :  { %1285 = vsyncpa [#allocation4 + $0x1], 1 }

</bundles_post_ra>
